<compile_context>
chip_gen: v5e
topology: v5e:2x2
jax: 0.10.0
libtpu: 0.0.40
codegen_flags: <defaults>
</compile_context>

<pallas_src>
import functools

import jax
import jax.numpy as jnp
from jax.experimental import pallas as pl
from jax.experimental.pallas import tpu as pltpu


def _pick_tile(dim, candidates):
    """Largest candidate that evenly divides `dim`; else the full dim (always legal)."""
    for c in candidates:
        if dim % c == 0:
            return c
    return dim


def _head_group(nh, hd):
    """Largest divisor of nh such that group*hd stays near/above 128 lanes (lane-dense stores)."""
    target = max(1, 128 // hd)
    for c in range(min(nh, target), 0, -1):
        if nh % c == 0:
            return c
    return 1


# ----------------------------------------------------------------------------
# Tiled linear: [M,K] x [K,N] + bias (+ activation) (+ fused residual + LayerNorm)
# ----------------------------------------------------------------------------
def _linear_kernel(*refs, activation, fuse_ln, single_k, eps):
    if fuse_ln:
        x_ref, w_ref, b_ref, r_ref, g_ref, be_ref, o_ref = refs[:7]
        rest = refs[7:]
    else:
        x_ref, w_ref, b_ref, o_ref = refs[:4]
        rest = refs[4:]
        r_ref = g_ref = be_ref = None
    acc_ref = rest[0] if rest else None

    # bf16 operands straight into the MXU (no in-kernel casts), f32 accumulation.
    part = jnp.dot(x_ref[...], w_ref[...], preferred_element_type=jnp.float32)

    def finalize(acc):
        acc = acc + b_ref[...]                      # (1, tn) f32 bias broadcasts over rows
        if activation == "gelu":
            # TODO(synk): HF BERT uses exact (erf) GELU; tanh approximation kept to
            # stay within guaranteed Mosaic lowerings.
            acc = jax.nn.gelu(acc, approximate=True)
        elif activation == "tanh":
            acc = jnp.tanh(acc)
        if fuse_ln:
            acc = acc + r_ref[...].astype(jnp.float32)
            mean = jnp.mean(acc, axis=-1, keepdims=True)
            var = jnp.mean(jnp.square(acc - mean), axis=-1, keepdims=True)
            acc = (acc - mean) * jax.lax.rsqrt(var + eps)
            acc = acc * g_ref[...] + be_ref[...]
        o_ref[...] = acc.astype(o_ref.dtype)

    if single_k:
        finalize(part)
    else:
        @pl.when(pl.program_id(2) == 0)
        def _():
            acc_ref[...] = jnp.zeros_like(acc_ref)

        acc_ref[...] += part

        @pl.when(pl.program_id(2) == pl.num_programs(2) - 1)
        def _():
            finalize(acc_ref[...])


def linear(x, w, b, activation=None, residual=None, ln_gamma=None, ln_beta=None,
           eps=1e-12, tm=512, tn=512, tk=None):
    """x: [M, K] bf16, w: [K, N] bf16, b: [N] f32 -> [M, N] bf16.

    Optional fused epilogue: activation, then LayerNorm(result + residual) when
    `residual`/`ln_gamma`/`ln_beta` are given (requires tn == N, enforced here).
    """
    M, K = x.shape
    N = w.shape[1]
    fuse_ln = residual is not None
    tm = _pick_tile(M, (tm, 256, 128, 64, 32, 16, 8))
    tn = N if fuse_ln else _pick_tile(N, (tn, 512, 384, 256, 128))
    tk = K if tk is None else _pick_tile(K, (tk, 512, 256, 128))
    single_k = (tk == K)

    if single_k:
        grid = (M // tm, N // tn)
        dims = ("parallel", "parallel")
        ix = lambda i, j: (i, 0)
        wx = lambda i, j: (0, j)
        nx = lambda i, j: (0, j)
        oxy = lambda i, j: (i, j)
        scratch = []
    else:
        grid = (M // tm, N // tn, K // tk)
        dims = ("parallel", "parallel", "arbitrary")
        ix = lambda i, j, k: (i, k)
        wx = lambda i, j, k: (k, j)
        nx = lambda i, j, k: (0, j)
        oxy = lambda i, j, k: (i, j)
        scratch = [pltpu.VMEM((tm, tn), jnp.float32)]

    in_specs = [pl.BlockSpec((tm, tk), ix),
                pl.BlockSpec((tk, tn), wx),
                pl.BlockSpec((1, tn), nx)]
    args = [x, w, b.reshape(1, N)]
    if fuse_ln:
        in_specs += [pl.BlockSpec((tm, tn), oxy),
                     pl.BlockSpec((1, tn), nx),
                     pl.BlockSpec((1, tn), nx)]
        args += [residual, ln_gamma, ln_beta]

    return pl.pallas_call(
        functools.partial(_linear_kernel, activation=activation,
                          fuse_ln=fuse_ln, single_k=single_k, eps=eps),
        out_shape=jax.ShapeDtypeStruct((M, N), x.dtype),
        grid=grid,
        in_specs=in_specs,
        out_specs=pl.BlockSpec((tm, tn), oxy),
        scratch_shapes=scratch,
        compiler_params=pltpu.CompilerParams(
            dimension_semantics=dims,
            vmem_limit_bytes=32 * 1024 * 1024,      # safe on v5e/v6e (128 MiB) and v7x (64 MiB)
        ),
    )(*args)


# ----------------------------------------------------------------------------
# Standalone LayerNorm (only used after the embedding sum), rows tiled.
# ----------------------------------------------------------------------------
def _layernorm_kernel(x_ref, g_ref, b_ref, o_ref, *, eps):
    x = x_ref[...].astype(jnp.float32)
    mean = jnp.mean(x, axis=-1, keepdims=True)
    var = jnp.mean(jnp.square(x - mean), axis=-1, keepdims=True)
    y = (x - mean) * jax.lax.rsqrt(var + eps)
    o_ref[...] = (y * g_ref[...] + b_ref[...]).astype(o_ref.dtype)


def layernorm(x, gamma, beta, eps=1e-12, tm=512, out_dtype=None):
    """x: [M, H]; gamma/beta: [1, H] -> LN(x) cast to out_dtype (bf16 for activations)."""
    M, H = x.shape
    out_dtype = out_dtype or x.dtype
    tm = _pick_tile(M, (tm, 256, 128, 64, 32, 16, 8))
    row_spec = pl.BlockSpec((tm, H), lambda i: (i, 0))
    vec_spec = pl.BlockSpec((1, H), lambda i: (0, 0))
    return pl.pallas_call(
        functools.partial(_layernorm_kernel, eps=eps),
        out_shape=jax.ShapeDtypeStruct((M, H), out_dtype),
        grid=(M // tm,),
        in_specs=[row_spec, vec_spec, vec_spec],
        out_specs=row_spec,
        compiler_params=pltpu.CompilerParams(dimension_semantics=("parallel",)),
    )(x, gamma, beta)


# ----------------------------------------------------------------------------
# Multi-head self-attention.  Heads unrolled in lane-aligned groups; no host
# transposes and no [B*nh, S, S] mask.  K/V slab stays VMEM-resident per batch;
# queries get their own (parallel) grid axis for long sequences / v7x megacore.
# ----------------------------------------------------------------------------
def _attention_kernel(*refs, nh, hd, hg, scale, tiled):
    if tiled:
        q_ref, kv_ref, m_ref, o_ref = refs
    else:
        q_ref, m_ref, o_ref = refs
        kv_ref = None
    H = nh * hd
    mask = m_ref[0]                               # (1, S) additive mask, broadcasts over rows
    slab = q_ref[0]                               # (tq, 3H) bf16
    kv = kv_ref[0] if tiled else slab             # (S, 3H) bf16
    q_all = slab[:, :H] * scale                   # fold 1/sqrt(hd) into Q (tq*H VPU mul, not S^2)

    # TODO(synk): for very long sequences, switch to a flash-style KV-blocked
    # online-softmax loop to keep the (tq, S) score matrix out of VMEM.
    for g in range(nh // hg):
        parts = []
        for h in range(g * hg, (g + 1) * hg):     # static unroll, hg heads per 128-lane store
            q = q_all[:, h * hd:(h + 1) * hd]                       # (tq, hd)
            k = kv[:, H + h * hd:H + (h + 1) * hd]                  # (S, hd)
            v = kv[:, 2 * H + h * hd:2 * H + (h + 1) * hd]          # (S, hd)
            s = jnp.dot(q, k.T, preferred_element_type=jnp.float32) + mask
            s = s - jnp.max(s, axis=-1, keepdims=True)
            p = jnp.exp(s)
            p = p * pl.reciprocal(jnp.sum(p, axis=-1, keepdims=True), approx=True)
            parts.append(jnp.dot(p.astype(jnp.bfloat16), v,
                                 preferred_element_type=jnp.float32))
        chunk = parts[0] if len(parts) == 1 else jnp.concatenate(parts, axis=-1)
        # Lane-dense store of this head group's merged context.
        o_ref[0, :, g * hg * hd:(g + 1) * hg * hd] = chunk.astype(o_ref.dtype)


def attention(qkv, mask_add, nh, hd, scale):
    """qkv: [B, S, 3H] bf16 (fused Q|K|V), mask_add: [B, 1, S] f32 additive -> [B, S, H] bf16."""
    B, S, threeH = qkv.shape
    H = nh * hd
    hg = _head_group(nh, hd)
    tq = S if S <= 512 else _pick_tile(S, (512, 256, 128))
    tiled = tq != S
    kernel = functools.partial(_attention_kernel, nh=nh, hd=hd, hg=hg,
                               scale=scale, tiled=tiled)
    if tiled:
        grid = (B, S // tq)
        in_specs = [
            pl.BlockSpec((1, tq, threeH), lambda b, qi: (b, qi, 0)),   # query rows
            pl.BlockSpec((1, S, threeH), lambda b, qi: (b, 0, 0)),     # resident K/V slab
            pl.BlockSpec((1, 1, S), lambda b, qi: (b, 0, 0)),
        ]
        out_spec = pl.BlockSpec((1, tq, H), lambda b, qi: (b, qi, 0))
        dims = ("parallel", "parallel")            # lets v7x megacore shard even at B == 1
        args = (qkv, qkv, mask_add)
    else:
        grid = (B,)
        in_specs = [
            pl.BlockSpec((1, S, threeH), lambda b: (b, 0, 0)),
            pl.BlockSpec((1, 1, S), lambda b: (b, 0, 0)),
        ]
        out_spec = pl.BlockSpec((1, S, H), lambda b: (b, 0, 0))
        dims = ("parallel",)
        args = (qkv, mask_add)

    return pl.pallas_call(
        kernel,
        out_shape=jax.ShapeDtypeStruct((B, S, H), qkv.dtype),
        grid=grid,
        in_specs=in_specs,
        out_specs=out_spec,
        compiler_params=pltpu.CompilerParams(
            dimension_semantics=dims,
            vmem_limit_bytes=32 * 1024 * 1024,
        ),
    )(*args)


# ----------------------------------------------------------------------------
# Deterministic synthetic parameters (shapes implied by BertModel + classifier)
# ----------------------------------------------------------------------------
def init_params(key, cfg):
    H, I = cfg["hidden"], cfg["intermediate"]
    V, P, T = cfg["vocab"], cfg["max_pos"], cfg["type_vocab"]
    L, C = cfg["layers"], cfg["labels"]
    keys = iter(jax.random.split(key, 64))

    def nrm(shape, std=0.02):
        return jax.random.normal(next(keys), shape, jnp.float32) * std

    bf = jnp.bfloat16
    params = {
        "word_emb": nrm((V, H)),
        "pos_emb": nrm((P, H)),
        "type_emb": nrm((T, H)),
        "emb_ln_g": jnp.ones((1, H), jnp.float32),
        "emb_ln_b": jnp.zeros((1, H), jnp.float32),
        "layers": [],
        "pool_w": nrm((H, H)),
        "pool_b": jnp.zeros((H,), jnp.float32),
    }
    for _ in range(L):
        params["layers"].append({
            # fused Q|K|V projection: [H, 3H] weight (columns = [Wq|Wk|Wv]), [3H] bias.
            # Weights pre-cast to bf16 once: half the HBM bytes, no per-tile casts.
            "qkv_w": nrm((H, 3 * H)).astype(bf), "qkv_b": jnp.zeros((3 * H,), jnp.float32),
            "ao_w": nrm((H, H)).astype(bf), "ao_b": jnp.zeros((H,), jnp.float32),
            "ao_ln_g": jnp.ones((1, H), jnp.float32),
            "ao_ln_b": jnp.zeros((1, H), jnp.float32),
            "ff_i_w": nrm((H, I)).astype(bf), "ff_i_b": jnp.zeros((I,), jnp.float32),
            "ff_o_w": nrm((I, H)).astype(bf), "ff_o_b": jnp.zeros((H,), jnp.float32),
            "ff_ln_g": jnp.ones((1, H), jnp.float32),
            "ff_ln_b": jnp.zeros((1, H), jnp.float32),
        })
    # classifier: nn.Linear(hidden, num_labels) with xavier_normal_ weights
    xavier_std = (2.0 / (H + C)) ** 0.5
    params["cls_w"] = nrm((H, C), xavier_std)
    params["cls_b"] = jnp.zeros((C,), jnp.float32)
    return params


# ----------------------------------------------------------------------------
# Forward pass (BertModel -> pooled_output -> dropout -> classifier)
# ----------------------------------------------------------------------------
def bert_classification_forward(params, input_ids, token_type_ids, attention_mask, cfg):
    B, S = input_ids.shape
    H, nh = cfg["hidden"], cfg["heads"]
    hd = H // nh

    # Embeddings (gathers are glue in plain JAX; normalization in Pallas, bf16 out).
    pos_ids = jnp.arange(S)[None, :]
    x = (params["word_emb"][input_ids]
         + params["pos_emb"][pos_ids]
         + params["type_emb"][token_type_ids])                       # [B, S, H] f32
    x = layernorm(x.reshape(B * S, H), params["emb_ln_g"], params["emb_ln_b"],
                  out_dtype=jnp.bfloat16)                            # [B*S, H] bf16
    # TODO(synk): nn.Dropout is identity here (inference / eval mode).

    # Additive attention mask kept at [B, 1, S]; broadcast happens inside the kernel.
    mask_add = ((1.0 - attention_mask.astype(jnp.float32)) * -10000.0).reshape(B, 1, S)
    scale = 1.0 / (hd ** 0.5)

    for layer in params["layers"]:
        qkv = linear(x, layer["qkv_w"], layer["qkv_b"], tn=768)            # [B*S, 3H] bf16
        ctx = attention(qkv.reshape(B, S, 3 * H), mask_add, nh, hd, scale)  # [B, S, H] bf16
        # attention-output linear with fused residual-add + LayerNorm epilogue
        x = linear(ctx.reshape(B * S, H), layer["ao_w"], layer["ao_b"],
                   residual=x, ln_gamma=layer["ao_ln_g"], ln_beta=layer["ao_ln_b"])
        inter = linear(x, layer["ff_i_w"], layer["ff_i_b"],
                       activation="gelu", tn=1024)                          # [B*S, I] bf16
        # FF-output linear with fused residual-add + LayerNorm epilogue
        x = linear(inter, layer["ff_o_w"], layer["ff_o_b"],
                   residual=x, ln_gamma=layer["ff_ln_g"], ln_beta=layer["ff_ln_b"])

    hidden = x.reshape(B, S, H)
    cls_tok = hidden[:, 0, :].astype(jnp.float32)                    # [CLS] token, [B, H]
    # Tiny pooler / classifier matmuls stay in plain XLA: M=B and N=num_labels are
    # far below (8,128) granularity, so a pallas_call would be all launch overhead
    # and masked partial stores.
    pooled = jnp.tanh(cls_tok @ params["pool_w"] + params["pool_b"])
    # dropout(pooled) -> identity in eval mode
    logits = pooled @ params["cls_w"] + params["cls_b"]              # [B, num_labels] f32
    return logits


if __name__ == "__main__":
    cfg = dict(hidden=32, heads=4, intermediate=64, vocab=100, max_pos=64,
               type_vocab=2, layers=2, labels=3)
    key = jax.random.PRNGKey(0)
    pkey, dkey = jax.random.split(key)
    params = init_params(pkey, cfg)

    B, S = 2, 8
    input_ids = jax.random.randint(dkey, (B, S), 0, cfg["vocab"], dtype=jnp.int32)
    token_type_ids = jnp.zeros((B, S), jnp.int32)
    attention_mask = jnp.ones((B, S), jnp.int32)

    logits = bert_classification_forward(params, input_ids, token_type_ids,
                                         attention_mask, cfg)
    jax.block_until_ready(logits)
    assert logits.shape == (B, cfg["labels"]) and logits.dtype == jnp.float32
    print("KERNEL_OK")
</pallas_src>

<mosaic_0001>
module attributes {stable_mosaic.version = 11 : i64} {
  func.func @_layernorm_kernel(%arg0: i32, %arg1: memref<16x32xf32, #tpu.memory_space<vmem>>, %arg2: memref<1x32xf32, #tpu.memory_space<vmem>>, %arg3: memref<1x32xf32, #tpu.memory_space<vmem>>, %arg4: memref<16x32xbf16, #tpu.memory_space<vmem>>) attributes {dimension_semantics = [#tpu.dimension_semantics<parallel>], iteration_bounds = array<i64: 1>, scalar_prefetch = 0 : i64, scratch_operands = 0 : i64, tpu.core_type = #tpu.core_type<tc>, window_params = [{transform_indices = @transform_0, window_bounds = array<i64: 16, 32>}, {pipeline_mode = #tpu.pipeline_mode<synchronous>, transform_indices = @transform_1, window_bounds = array<i64: 1, 32>}, {pipeline_mode = #tpu.pipeline_mode<synchronous>, transform_indices = @transform_2, window_bounds = array<i64: 1, 32>}, {transform_indices = @transform_3, window_bounds = array<i64: 16, 32>}]} {
    %c0 = arith.constant 0 : index
    %c0_0 = arith.constant 0 : index
    %0 = vector.load %arg1[%c0, %c0_0] : memref<16x32xf32, #tpu.memory_space<vmem>>, vector<16x32xf32>
    %cst = arith.constant dense<0.000000e+00> : vector<16xf32>
    %1 = vector.multi_reduction <add>, %0, %cst [1] : vector<16x32xf32> to vector<16xf32>
    %2 = vector.shape_cast %1 : vector<16xf32> to vector<16x1xf32>
    %cst_1 = arith.constant 3.200000e+01 : f32
    %3 = vector.broadcast %cst_1 : f32 to vector<16x1xf32>
    %4 = arith.divf %2, %3 : vector<16x1xf32>
    %5 = vector.broadcast %4 : vector<16x1xf32> to vector<16x32xf32>
    %6 = arith.subf %0, %5 : vector<16x32xf32>
    %7 = arith.mulf %6, %6 : vector<16x32xf32>
    %cst_2 = arith.constant dense<0.000000e+00> : vector<16xf32>
    %8 = vector.multi_reduction <add>, %7, %cst_2 [1] : vector<16x32xf32> to vector<16xf32>
    %9 = vector.shape_cast %8 : vector<16xf32> to vector<16x1xf32>
    %cst_3 = arith.constant 3.200000e+01 : f32
    %10 = vector.broadcast %cst_3 : f32 to vector<16x1xf32>
    %11 = arith.divf %9, %10 : vector<16x1xf32>
    %12 = vector.broadcast %4 : vector<16x1xf32> to vector<16x32xf32>
    %13 = arith.subf %0, %12 : vector<16x32xf32>
    %cst_4 = arith.constant 9.99999996E-13 : f32
    %14 = vector.broadcast %cst_4 : f32 to vector<16x1xf32>
    %15 = arith.addf %11, %14 : vector<16x1xf32>
    %16 = math.rsqrt %15 : vector<16x1xf32>
    %17 = vector.broadcast %16 : vector<16x1xf32> to vector<16x32xf32>
    %18 = arith.mulf %13, %17 : vector<16x32xf32>
    %c0_5 = arith.constant 0 : index
    %c0_6 = arith.constant 0 : index
    %19 = vector.load %arg2[%c0_5, %c0_6] : memref<1x32xf32, #tpu.memory_space<vmem>>, vector<1x32xf32>
    %20 = vector.broadcast %19 : vector<1x32xf32> to vector<16x32xf32>
    %21 = arith.mulf %18, %20 : vector<16x32xf32>
    %c0_7 = arith.constant 0 : index
    %c0_8 = arith.constant 0 : index
    %22 = vector.load %arg3[%c0_7, %c0_8] : memref<1x32xf32, #tpu.memory_space<vmem>>, vector<1x32xf32>
    %23 = vector.broadcast %22 : vector<1x32xf32> to vector<16x32xf32>
    %24 = arith.addf %21, %23 : vector<16x32xf32>
    %25 = arith.truncf %24 : vector<16x32xf32> to vector<16x32xbf16>
    %c0_9 = arith.constant 0 : index
    %c0_10 = arith.constant 0 : index
    %26 = vector.load %arg4[%c0_9, %c0_10] : memref<16x32xbf16, #tpu.memory_space<vmem>>, vector<16x32xbf16>
    tpu.vector_store %arg4[%c0_9, %c0_10], %25 {strides = array<i32>} : memref<16x32xbf16, #tpu.memory_space<vmem>>, vector<16x32xbf16>,
    return
  }
  func.func @transform_0(%arg0: i32) -> (i32, i32) {
    %c0_i32 = arith.constant 0 : i32
    %c0_i32_0 = arith.constant 0 : i32
    return %arg0, %c0_i32 : i32, i32
  }
  func.func @transform_1(%arg0: i32) -> (i32, i32) {
    %c0_i32 = arith.constant 0 : i32
    %c0_i32_0 = arith.constant 0 : i32
    %c0_i32_1 = arith.constant 0 : i32
    return %c0_i32, %c0_i32_0 : i32, i32
  }
  func.func @transform_2(%arg0: i32) -> (i32, i32) {
    %c0_i32 = arith.constant 0 : i32
    %c0_i32_0 = arith.constant 0 : i32
    %c0_i32_1 = arith.constant 0 : i32
    return %c0_i32, %c0_i32_0 : i32, i32
  }
  func.func @transform_3(%arg0: i32) -> (i32, i32) {
    %c0_i32 = arith.constant 0 : i32
    %c0_i32_0 = arith.constant 0 : i32
    return %arg0, %c0_i32 : i32, i32
  }
}

</mosaic_0001>

<bundles_post_ra>
// kernel: tpu_custom_call.1
= control target key start
LH: loop header
LB: loop body
LE: loop exit
PB: predicated region body
PF: predicated region fallthrough
CT: control target
= control target key end

     0   :  { %8 = vsyncpa [#allocation3], 0  ;;  %s274_s0 = inlined_call_operand.hbm [shape: f32[16,32], index: 0, kind: input, shape index: {}]   ;;  %s275_s1 = inlined_call_operand.hbm [shape: f32[1,32], index: 1, kind: input, shape index: {}]   ;;  %s276_s2 = inlined_call_operand.vmem [shape: f32[1,32], index: 2, kind: input, shape index: {}]   ;;  %s277_s3 = inlined_call_operand.hbm [shape: bf16[16,32], index: 3, kind: output, shape index: {}]  }
   0x1   :  { %9 = vsyncpa [#allocation6], 0 }
   0x2   :  { %10 = vsyncpa [#allocation4], 0  ;;  %s15_s14 = sshll.u32 %s274_s0, 4  ;;  %s230_s15 = smov [#allocation2]   ;;  %s16_s14 = int_to_ptr.hbm [resolvable:$true] %s15_s14 }
   0x3   :  { %s17_s16 = sshll.u32 %s230_s15, 4  ;;  %s29_s19 = sshll.u32 %s275_s1, 4  ;;  %s18_s16 = int_to_ptr.vmem [resolvable:$true] %s17_s16  ;;  %s30_s19 = int_to_ptr.hbm [resolvable:$true] %s29_s19 }
   0x4   :  { %s231_s20 = smov 128   ;;  %s232_s21 = smov 8  }
   0x5   :  { %23 = dma.hbm_to_vmem [thread:$0]  %s16_s14, 256, %s18_s16, [#allocation3], %s231_s20, %s231_s20, %s232_s21  }
   0x6   :  { %s233_s22 = smov [#allocation5]  }
   0x7   :  { %s31_s23 = sshll.u32 %s233_s22, 4  ;;  %s32_s23 = int_to_ptr.vmem [resolvable:$true] %s31_s23 }
   0x8   :  { %34 = dma.hbm_to_vmem [thread:$0]  %s30_s19, 16, %s32_s23, [#allocation6]  }
   0x9   :  { %224 = dma.done.wait [#allocation3], 256  }
   0xa   :  { %225 = vsyncadd [#allocation3], 4294967040 }
   0xb   :  { %226 = dma.done.wait [#allocation6], 16  }
   0xc   :  { %227 = vsyncadd [#allocation6], 4294967280  ;;  %vm47_vm0 = vcmask 261120   ;;  %v45_v0 = vld [vmem:[#allocation2] sm:$0xff]  ;;  %v46_v2 = vld [vmem:[#allocation2 + $0x8] sm:$0xff]  ;;  %v234_v4 = vmov 32.0  }
   0xd   :  { %v48_v1 = vsel %vm47_vm0, %v45_v0, 0.0  ;;  %v51_v3 = vsel %vm47_vm0, %v46_v2, 0.0  ;;  %146 = vrcp.f32 %v234_v4  ;;  %v144_v35 = vld [vmem:[#allocation5] ss:$0 sm:$0xff]  ;;  %v145_v38 = vld [vmem:[%s276_s2] ss:$0 sm:$0xff] }
   0xe   :  { %49 = vadd.xlane.f32.xlu0 %v48_v1  ;;  %vm113_vm7 = vcmask 257024   ;;  %s235_s24 = smov [#allocation7]   ;;  %s122_s2 = sshll.u32 %s277_s3, 4  ;;  %s123_s2 = int_to_ptr.hbm [resolvable:$true] %s122_s2 }
   0xf   :  { %s120_s25 = sshll.u32 %s235_s24, 4  ;;  %s236_s28 = smov 64   ;;  %s121_s25 = int_to_ptr.vmem [resolvable:$true] %s120_s25 }
  0x10   :  { %s237_s29 = smov 4  }
  0x13   :  { %v147_v5 = vpop.eup %146 }
  0x14   :  { %v55_v6 = vmul.f32 32.0, %v147_v5  ;;  %vm59_vm1 = vweird.f32 %v147_v5 }
  0x16   :  { %52 = vadd.xlane.f32.xlu0 %v51_v3  ;;  %v56_v7 = vsub.f32 1.0, %v55_v6 }
  0x18   :  { %v57_v8 = vmul.f32 %v147_v5, %v56_v7 }
  0x1a   :  { %v58_v9 = vadd.f32 %v147_v5, %v57_v8 }
  0x1c   :  { %v60_v10 = vsel %vm59_vm1, %v147_v5, %v58_v9 }
  0x81   :  { %v50_v11 = vpop.xlane.xlu0 %49 }
  0x82   :  { %v61_v12 = vmul.f32 %v60_v10, %v50_v11 }
  0x84   :  { %v63_v13 = vsub.f32 %v45_v0, %v61_v12 }
  0x86   :  { %v65_v14 = vmul.f32 %v63_v13, %v63_v13 }
  0x88   :  { %v67_v15 = vsel %vm47_vm0, %v65_v14, 0.0 }
  0x89   :  { %68 = vadd.xlane.f32.xlu1 %v67_v15  ;;  %v53_v16 = vpop.xlane.xlu0 %52 }
  0x8a   :  { %v62_v17 = vmul.f32 %v60_v10, %v53_v16 }
  0x8c   :  { %v64_v18 = vsub.f32 %v46_v2, %v62_v17 }
  0x8e   :  { %v66_v19 = vmul.f32 %v64_v18, %v64_v18 }
  0x90   :  { %v70_v20 = vsel %vm47_vm0, %v66_v19, 0.0 }
  0x91   :  { %71 = vadd.xlane.f32.xlu1 %v70_v20 }
  0xfc   :  { %v69_v21 = vpop.xlane.xlu1 %68 }
  0xfd   :  { %v73_v22 = vmul.f32 %v69_v21, %v60_v10 }
  0xff   :  { %v75_v23 = vadd.f32 1e-12, %v73_v22 }
 0x101   :  { %148 = vrsqrt.f32 %v75_v23  ;;  %vm83_vm3 = vweird.f32 %v75_v23 }
 0x104   :  { %v72_v24 = vpop.xlane.xlu1 %71 }
 0x105   :  { %v74_v25 = vmul.f32 %v72_v24, %v60_v10 }
 0x107   :  { %v149_v26 = vpop.eup %148  ;;  %v76_v27 = vadd.f32 1e-12, %v74_v25 }
 0x108   :  { %v78_v28 = vmul.f32 %v149_v26, %v75_v23  ;;  %vm84_vm2 = vweird.f32 %v149_v26 }
 0x109   :  { %150 = vrsqrt.f32 %v76_v27  ;;  %vm85_vm4 = vmor %vm83_vm3, %vm84_vm2  ;;  %vm93_vm6 = vweird.f32 %v76_v27 }
 0x10a   :  { %v79_v29 = vmul.f32 %v149_v26, %v78_v28 }
 0x10c   :  { %v80_v30 = vmul.f32 0.5, %v79_v29 }
 0x10e   :  { %v81_v31 = vsub.f32 1.5, %v80_v30 }
 0x10f   :  { %v151_v32 = vpop.eup %150 }
 0x110   :  { %v82_v33 = vmul.f32 %v149_v26, %v81_v31  ;;  %v88_v34 = vmul.f32 %v151_v32, %v76_v27  ;;  %vm94_vm5 = vweird.f32 %v151_v32 }
 0x111   :  { %vm95_vm8 = vmor %vm93_vm6, %vm94_vm5 }
 0x112   :  { %v86_v36 = vsel %vm85_vm4, %v149_v26, %v82_v33  ;;  %v89_v37 = vmul.f32 %v151_v32, %v88_v34 }
 0x113   :  { %v97_v39 = vmul.f32 %v86_v36, %v63_v13 }
 0x114   :  { %v90_v40 = vmul.f32 0.5, %v89_v37 }
 0x115   :  { %v103_v41 = vmul.f32 %v144_v35, %v97_v39 }
 0x116   :  { %v91_v42 = vsub.f32 1.5, %v90_v40 }
 0x117   :  { %v109_v43 = vadd.f32 %v145_v38, %v103_v41 }
 0x118   :  { %v92_v44 = vmul.f32 %v151_v32, %v91_v42 }
 0x119   :  { %v111_v45 = vpack.c.bf16 %v109_v43, %v109_v43 }
 0x11a   :  { %v96_v46 = vsel %vm95_vm8, %v151_v32, %v92_v44 }
 0x11b   :  { %v98_v47 = vmul.f32 %v96_v46, %v64_v18  ;;  %114 = vst.msk [vmem:[#allocation7] sm:$0xf] %vm113_vm7, %v111_v45 }
 0x11d   :  { %v104_v48 = vmul.f32 %v144_v35, %v98_v47 }
 0x11f   :  { %v110_v49 = vadd.f32 %v145_v38, %v104_v48 }
 0x121   :  { %v112_v50 = vpack.c.bf16 %v110_v49, %v110_v49 }
 0x123   :  { %115 = vst.msk [vmem:[#allocation7 + $0x4] sm:$0xf] %vm113_vm7, %v112_v50 }
 0x124   :  { %128 = dma.vmem_to_hbm [thread:$0]  %s121_s25, 128, %s123_s2, [#allocation4], %s236_s28, %s236_s28, %s237_s29  }
 0x125   :  { %228 = dma.done.wait [#allocation4], 128  }
 0x126   :  { %229 = vsyncadd [#allocation4], 4294967168 }
 0x127   :  { %133 = vsyncpa [#allocation3], 1 }
 0x128   :  { %134 = vsyncpa [#allocation6], 1 }
 0x129   :  { %135 = vsyncpa [#allocation4], 1 }

</bundles_post_ra>
